<compile_context>
chip_gen: v6e
topology: v6e:2x2x1
jax: 0.10.0
libtpu: 0.0.40
codegen_flags: <defaults>
</compile_context>

<pallas_src>
import functools

import jax
import jax.numpy as jnp
from jax import lax
from jax.experimental import pallas as pl
from jax.experimental.pallas import tpu as pltpu


def _round_up(x, mult):
    return ((x + mult - 1) // mult) * mult


def _amsoftmax_kernel(x_ref, w_ref, lb_ref, out_ref,
                      m_run, l_run, t_run,
                      *, ms, tile_k, n_classes, has_pad):
    k = pl.program_id(1)
    nk = pl.num_programs(1)

    # ---- once per N tile: reset online-softmax state ----
    @pl.when(k == 0)
    def _init():
        m_run[...] = jnp.full_like(m_run, -jnp.inf)
        l_run[...] = jnp.zeros_like(l_run)
        t_run[...] = jnp.zeros_like(t_run)

    # ---- per K tile ----
    # bf16 x bf16 -> f32 MXU matmul; x and W are pre-normalized and W is pre-scaled
    # by s, so `logits` is already s * cos(theta).
    logits = jnp.dot(x_ref[...], w_ref[...],
                     preferred_element_type=jnp.float32)            # (tn, tk) f32

    # Target mask: k-invariant local iota vs. (lb - k*tile_k), a (tn,1) op.
    lb_local = lb_ref[...] - k * tile_k                              # (tn, 1) int32
    col = lax.broadcasted_iota(jnp.int32, logits.shape, 1)           # (tn, tk)
    is_tgt = col == lb_local

    # AM-softmax margin: z_tgt = s*(cos - m) == logits - m*s at target positions.
    logits = logits - jnp.where(is_tgt, ms, 0.0)

    if has_pad:
        # Only the last K tile holds padded (all-zero) W columns; the scalar threshold
        # is >= tile_k on every other tile, so the select is a no-op there.
        logits = jnp.where(col < n_classes - k * tile_k, logits, -jnp.inf)

    # Target logit (each row's target class falls in exactly one K tile).
    t_run[...] += jnp.sum(jnp.where(is_tgt, logits, 0.0), axis=1, keepdims=True)

    # Online logsumexp update.
    m_prev = m_run[...]
    m_new = jnp.maximum(m_prev, jnp.max(logits, axis=1, keepdims=True))
    alpha = jnp.exp(m_prev - m_new)
    l_run[...] = alpha * l_run[...] + jnp.sum(jnp.exp(logits - m_new),
                                              axis=1, keepdims=True)
    m_run[...] = m_new

    # ---- finalize on the last K tile: loss_i = logsumexp_i - z_target_i ----
    @pl.when(k == nk - 1)
    def _finalize():
        loss = m_run[...] + jnp.log(l_run[...]) - t_run[...]         # (tn, 1)
        # Lane-dense store (full-width vst); wrapper reads column 0.
        out_ref[...] = jnp.broadcast_to(loss, out_ref.shape)


def partial_fc_amsoftmax(x, lb, W, *, m=0.3, s=15.0, reduction="mean",
                         tile_n=512, tile_k=1024):
    """x: (N, emb_dim) f32, lb: (N,) int, W: (emb_dim, n_ids) f32 -> AM-softmax loss."""
    N, D = x.shape
    Dw, K = W.shape
    assert D == Dw

    # ---- tile selection ----
    SUB = 16  # sublane granularity safe for bf16 blocks
    n16 = _round_up(N, SUB)
    tn = min(tile_n, n16)
    # v7x megacore: prefer >= 2 blocks on the "parallel" N axis when the batch allows.
    if _round_up(n16, tn) // tn < 2 and n16 > SUB:
        tn = _round_up((n16 + 1) // 2, SUB)
    n_pad = _round_up(N, tn)

    tk = min(tile_k, _round_up(K, 128))
    k_pad = _round_up(K, tk)
    has_pad = k_pad > K

    # ---- preprocessing: normalize in f32, fold s into W, cast bf16, pad (fused) ----
    x32 = x.astype(jnp.float32)
    inv_xn = lax.rsqrt(jnp.maximum(jnp.sum(x32 * x32, axis=1, keepdims=True), 1e-24))
    x_p = jnp.pad((x32 * inv_xn).astype(jnp.bfloat16), ((0, n_pad - N), (0, 0)))

    w32 = W.astype(jnp.float32)
    inv_wn = lax.rsqrt(jnp.maximum(jnp.sum(w32 * w32, axis=0, keepdims=True), 1e-24))
    w_p = jnp.pad((w32 * (inv_wn * float(s))).astype(jnp.bfloat16),
                  ((0, 0), (0, k_pad - K)))

    lb_p = jnp.pad(lb.astype(jnp.int32), (0, n_pad - N)).reshape(n_pad, 1)

    grid = (n_pad // tn, k_pad // tk)

    kernel = functools.partial(_amsoftmax_kernel,
                               ms=float(m) * float(s),
                               tile_k=tk, n_classes=K, has_pad=has_pad)

    # VMEM footprint: bf16 W double-buffer + resident bf16 x + lane-padded lb/out/scratch
    # blocks + f32 (tn, tk) temporaries.  Cap at 48 MiB (never the full 64 MiB of v7x).
    vmem_needed = (2 * D * tk * 2          # W stream (double-buffered, bf16)
                   + 2 * tn * D * 2        # x block (bf16)
                   + 7 * tn * 128 * 4      # lb/out blocks + m/l/t scratch (lane-padded)
                   + 4 * tn * tk * 4)      # f32 logits / exp temporaries
    vmem_limit = int(min(48 * 1024 * 1024,
                         max(32 * 1024 * 1024, vmem_needed + (4 << 20))))

    out = pl.pallas_call(
        kernel,
        out_shape=jax.ShapeDtypeStruct((n_pad, 128), jnp.float32),
        grid_spec=pltpu.PrefetchScalarGridSpec(
            num_scalar_prefetch=0,
            grid=grid,
            in_specs=[
                pl.BlockSpec((tn, D), lambda n, k: (n, 0)),    # x: resident across K
                pl.BlockSpec((D, tk), lambda n, k: (0, k)),    # W: streamed along K
                pl.BlockSpec((tn, 1), lambda n, k: (n, 0)),    # labels: resident across K
            ],
            out_specs=pl.BlockSpec((tn, 128), lambda n, k: (n, 0)),
            scratch_shapes=[
                pltpu.VMEM((tn, 1), jnp.float32),    # running max
                pltpu.VMEM((tn, 1), jnp.float32),    # running exp-sum
                pltpu.VMEM((tn, 1), jnp.float32),    # target logit
            ],
        ),
        compiler_params=pltpu.CompilerParams(
            dimension_semantics=("parallel", "arbitrary"),
            vmem_limit_bytes=vmem_limit,
        ),
    )(x_p, w_p, lb_p)

    loss_vec = out[:N, 0]
    if reduction == "mean":
        return jnp.mean(loss_vec)
    if reduction == "sum":
        return jnp.sum(loss_vec)
    return loss_vec


def _reference(x, lb, W, m=0.3, s=15.0):
    x_n = x / jnp.maximum(jnp.linalg.norm(x, axis=1, keepdims=True), 1e-12)
    w_n = W / jnp.maximum(jnp.linalg.norm(W, axis=0, keepdims=True), 1e-12)
    logits = x_n @ w_n
    onehot = jax.nn.one_hot(lb, W.shape[1], dtype=jnp.float32)
    logits = (logits - m * onehot) * s
    logp = jax.nn.log_softmax(logits, axis=1)
    return -jnp.mean(jnp.sum(logp * onehot, axis=1))


if __name__ == "__main__":
    key = jax.random.PRNGKey(0)
    k_x, k_lb, k_w = jax.random.split(key, 3)

    N, emb_dim, n_ids = 8, 32, 16
    m, s = 0.3, 15.0

    x = jax.random.normal(k_x, (N, emb_dim), dtype=jnp.float32)
    lb = jax.random.randint(k_lb, (N,), 0, n_ids, dtype=jnp.int32)

    # Deterministic xavier_normal init for W (emb_dim, n_ids): std = sqrt(2/(fan_in+fan_out))
    std = (2.0 / (emb_dim + n_ids)) ** 0.5
    W = std * jax.random.normal(k_w, (emb_dim, n_ids), dtype=jnp.float32)

    loss = partial_fc_amsoftmax(x, lb, W, m=m, s=s, reduction="mean")
    loss = jax.block_until_ready(loss)

    ref = _reference(x, lb, W, m=m, s=s)
    # bf16 MXU inputs (f32 accumulation) -> compare against the f32 reference with a
    # correspondingly loosened tolerance.
    assert jnp.isfinite(loss), loss
    assert jnp.allclose(loss, ref, rtol=2e-2, atol=2e-2), (loss, ref)

    print("KERNEL_OK")
</pallas_src>

<mosaic_0001>
module attributes {stable_mosaic.version = 11 : i64} {
  func.func @_amsoftmax_kernel(%arg0: i32, %arg1: i32, %arg2: memref<16x32xbf16, #tpu.memory_space<vmem>>, %arg3: memref<32x128xbf16, #tpu.memory_space<vmem>>, %arg4: memref<16x1xi32, #tpu.memory_space<vmem>>, %arg5: memref<16x128xf32, #tpu.memory_space<vmem>>, %arg6: memref<16x1xf32, #tpu.memory_space<vmem>>, %arg7: memref<16x1xf32, #tpu.memory_space<vmem>>, %arg8: memref<16x1xf32, #tpu.memory_space<vmem>>) attributes {dimension_semantics = [#tpu.dimension_semantics<parallel>, #tpu.dimension_semantics<arbitrary>], iteration_bounds = array<i64: 1, 1>, scalar_prefetch = 0 : i64, scratch_operands = 3 : i64, tpu.core_type = #tpu.core_type<tc>, window_params = [{transform_indices = @transform_0, window_bounds = array<i64: 16, 32>}, {transform_indices = @transform_1, window_bounds = array<i64: 32, 128>}, {transform_indices = @transform_2, window_bounds = array<i64: 16, 1>}, {transform_indices = @transform_3, window_bounds = array<i64: 16, 128>}]} {
    %c0_i32 = arith.constant 0 : i32
    %0 = arith.cmpi eq, %arg1, %c0_i32 : i32
    %1 = arith.extui %0 : i1 to i32
    %c0_i32_0 = arith.constant 0 : i32
    %2 = arith.cmpi ne, %1, %c0_i32_0 : i32
    scf.if %2 {
      %cst_28 = arith.constant 0xFF800000 : f32
      %49 = vector.broadcast %cst_28 : f32 to vector<16x1xf32>
      %c0_29 = arith.constant 0 : index
      %c0_30 = arith.constant 0 : index
      %50 = vector.load %arg6[%c0_29, %c0_30] : memref<16x1xf32, #tpu.memory_space<vmem>>, vector<16x1xf32>
      tpu.vector_store %arg6[%c0_29, %c0_30], %49 {strides = array<i32>} : memref<16x1xf32, #tpu.memory_space<vmem>>, vector<16x1xf32>,
      %cst_31 = arith.constant 0.000000e+00 : f32
      %51 = vector.broadcast %cst_31 : f32 to vector<16x1xf32>
      %c0_32 = arith.constant 0 : index
      %c0_33 = arith.constant 0 : index
      %52 = vector.load %arg7[%c0_32, %c0_33] : memref<16x1xf32, #tpu.memory_space<vmem>>, vector<16x1xf32>
      tpu.vector_store %arg7[%c0_32, %c0_33], %51 {strides = array<i32>} : memref<16x1xf32, #tpu.memory_space<vmem>>, vector<16x1xf32>,
      %cst_34 = arith.constant 0.000000e+00 : f32
      %53 = vector.broadcast %cst_34 : f32 to vector<16x1xf32>
      %c0_35 = arith.constant 0 : index
      %c0_36 = arith.constant 0 : index
      %54 = vector.load %arg8[%c0_35, %c0_36] : memref<16x1xf32, #tpu.memory_space<vmem>>, vector<16x1xf32>
      tpu.vector_store %arg8[%c0_35, %c0_36], %53 {strides = array<i32>} : memref<16x1xf32, #tpu.memory_space<vmem>>, vector<16x1xf32>,
    } else {
    }
    %c0 = arith.constant 0 : index
    %c0_1 = arith.constant 0 : index
    %3 = vector.load %arg2[%c0, %c0_1] : memref<16x32xbf16, #tpu.memory_space<vmem>>, vector<16x32xbf16>
    %c0_2 = arith.constant 0 : index
    %c0_3 = arith.constant 0 : index
    %4 = vector.load %arg3[%c0_2, %c0_3] : memref<32x128xbf16, #tpu.memory_space<vmem>>, vector<32x128xbf16>
    %cst = arith.constant dense<0.000000e+00> : vector<16x128xf32>
    %5 = tpu.matmul %3, %4, %cst {dimension_numbers = #tpu.dot_dimension_numbers<[1], [0], [0], [1], [0, 0, 1, 1], [], []>} : vector<16x32xbf16>, vector<32x128xbf16>, vector<16x128xf32> -> vector<16x128xf32>
    %c0_4 = arith.constant 0 : index
    %c0_5 = arith.constant 0 : index
    %6 = vector.load %arg4[%c0_4, %c0_5] : memref<16x1xi32, #tpu.memory_space<vmem>>, vector<16x1xi32>
    %c128_i32 = arith.constant 128 : i32
    %7 = arith.muli %arg1, %c128_i32 : i32
    %8 = vector.broadcast %7 : i32 to vector<16x1xi32>
    %9 = arith.subi %6, %8 : vector<16x1xi32>
    %10 = tpu.iota {dimensions = array<i32: 1>} : vector<16x128xi32>
    %11 = vector.broadcast %9 : vector<16x1xi32> to vector<16x128xi32>
    %12 = arith.cmpi eq, %10, %11 : vector<16x128xi32>
    %cst_6 = arith.constant 4.500000e+00 : f32
    %cst_7 = arith.constant 0.000000e+00 : f32
    %13 = vector.broadcast %cst_6 : f32 to vector<16x128xf32>
    %14 = vector.broadcast %cst_7 : f32 to vector<16x128xf32>
    %15 = arith.select %12, %13, %14 : vector<16x128xi1>, vector<16x128xf32>
    %16 = arith.subf %5, %15 : vector<16x128xf32>
    %c128_i32_8 = arith.constant 128 : i32
    %17 = arith.muli %arg1, %c128_i32_8 : i32
    %c16_i32 = arith.constant 16 : i32
    %18 = arith.subi %c16_i32, %17 : i32
    %19 = vector.broadcast %18 : i32 to vector<16x128xi32>
    %20 = arith.cmpi slt, %10, %19 : vector<16x128xi32>
    %cst_9 = arith.constant 0xFF800000 : f32
    %21 = vector.broadcast %cst_9 : f32 to vector<16x128xf32>
    %22 = arith.select %20, %16, %21 : vector<16x128xi1>, vector<16x128xf32>
    %c0_10 = arith.constant 0 : index
    %c0_11 = arith.constant 0 : index
    %23 = vector.load %arg8[%c0_10, %c0_11] : memref<16x1xf32, #tpu.memory_space<vmem>>, vector<16x1xf32>
    %cst_12 = arith.constant 0.000000e+00 : f32
    %24 = vector.broadcast %cst_12 : f32 to vector<16x128xf32>
    %25 = arith.select %12, %22, %24 : vector<16x128xi1>, vector<16x128xf32>
    %cst_13 = arith.constant dense<0.000000e+00> : vector<16xf32>
    %26 = vector.multi_reduction <add>, %25, %cst_13 [1] : vector<16x128xf32> to vector<16xf32>
    %27 = vector.shape_cast %26 : vector<16xf32> to vector<16x1xf32>
    %28 = arith.addf %23, %27 : vector<16x1xf32>
    %c0_14 = arith.constant 0 : index
    %c0_15 = arith.constant 0 : index
    %29 = vector.load %arg8[%c0_14, %c0_15] : memref<16x1xf32, #tpu.memory_space<vmem>>, vector<16x1xf32>
    tpu.vector_store %arg8[%c0_14, %c0_15], %28 {strides = array<i32>} : memref<16x1xf32, #tpu.memory_space<vmem>>, vector<16x1xf32>,
    %c0_16 = arith.constant 0 : index
    %c0_17 = arith.constant 0 : index
    %30 = vector.load %arg6[%c0_16, %c0_17] : memref<16x1xf32, #tpu.memory_space<vmem>>, vector<16x1xf32>
    %cst_18 = arith.constant dense<0xFF800000> : vector<16xf32>
    %31 = vector.multi_reduction <maximumf>, %22, %cst_18 [1] : vector<16x128xf32> to vector<16xf32>
    %32 = vector.shape_cast %31 : vector<16xf32> to vector<16x1xf32>
    %33 = arith.maximumf %30, %32 : vector<16x1xf32>
    %34 = arith.subf %30, %33 : vector<16x1xf32>
    %35 = math.exp %34 : vector<16x1xf32>
    %c0_19 = arith.constant 0 : index
    %c0_20 = arith.constant 0 : index
    %36 = vector.load %arg7[%c0_19, %c0_20] : memref<16x1xf32, #tpu.memory_space<vmem>>, vector<16x1xf32>
    %37 = arith.mulf %35, %36 : vector<16x1xf32>
    %38 = vector.broadcast %33 : vector<16x1xf32> to vector<16x128xf32>
    %39 = arith.subf %22, %38 : vector<16x128xf32>
    %40 = math.exp %39 : vector<16x128xf32>
    %cst_21 = arith.constant dense<0.000000e+00> : vector<16xf32>
    %41 = vector.multi_reduction <add>, %40, %cst_21 [1] : vector<16x128xf32> to vector<16xf32>
    %42 = vector.shape_cast %41 : vector<16xf32> to vector<16x1xf32>
    %43 = arith.addf %37, %42 : vector<16x1xf32>
    %c0_22 = arith.constant 0 : index
    %c0_23 = arith.constant 0 : index
    %44 = vector.load %arg7[%c0_22, %c0_23] : memref<16x1xf32, #tpu.memory_space<vmem>>, vector<16x1xf32>
    tpu.vector_store %arg7[%c0_22, %c0_23], %43 {strides = array<i32>} : memref<16x1xf32, #tpu.memory_space<vmem>>, vector<16x1xf32>,
    %c0_24 = arith.constant 0 : index
    %c0_25 = arith.constant 0 : index
    %45 = vector.load %arg6[%c0_24, %c0_25] : memref<16x1xf32, #tpu.memory_space<vmem>>, vector<16x1xf32>
    tpu.vector_store %arg6[%c0_24, %c0_25], %33 {strides = array<i32>} : memref<16x1xf32, #tpu.memory_space<vmem>>, vector<16x1xf32>,
    %c0_i32_26 = arith.constant 0 : i32
    %46 = arith.cmpi eq, %arg1, %c0_i32_26 : i32
    %47 = arith.extui %46 : i1 to i32
    %c0_i32_27 = arith.constant 0 : i32
    %48 = arith.cmpi ne, %47, %c0_i32_27 : i32
    scf.if %48 {
      %c0_28 = arith.constant 0 : index
      %c0_29 = arith.constant 0 : index
      %49 = vector.load %arg6[%c0_28, %c0_29] : memref<16x1xf32, #tpu.memory_space<vmem>>, vector<16x1xf32>
      %c0_30 = arith.constant 0 : index
      %c0_31 = arith.constant 0 : index
      %50 = vector.load %arg7[%c0_30, %c0_31] : memref<16x1xf32, #tpu.memory_space<vmem>>, vector<16x1xf32>
      %51 = math.log %50 : vector<16x1xf32>
      %52 = arith.addf %49, %51 : vector<16x1xf32>
      %c0_32 = arith.constant 0 : index
      %c0_33 = arith.constant 0 : index
      %53 = vector.load %arg8[%c0_32, %c0_33] : memref<16x1xf32, #tpu.memory_space<vmem>>, vector<16x1xf32>
      %54 = arith.subf %52, %53 : vector<16x1xf32>
      %55 = vector.shape_cast %54 : vector<16x1xf32> to vector<16x1xf32>
      %56 = vector.broadcast %55 : vector<16x1xf32> to vector<16x128xf32>
      %c0_34 = arith.constant 0 : index
      %c0_35 = arith.constant 0 : index
      %57 = vector.load %arg5[%c0_34, %c0_35] : memref<16x128xf32, #tpu.memory_space<vmem>>, vector<16x128xf32>
      tpu.vector_store %arg5[%c0_34, %c0_35], %56 {strides = array<i32>} : memref<16x128xf32, #tpu.memory_space<vmem>>, vector<16x128xf32>,
    } else {
    }
    return
  }
  func.func @transform_0(%arg0: i32, %arg1: i32) -> (i32, i32) {
    %c0_i32 = arith.constant 0 : i32
    %c0_i32_0 = arith.constant 0 : i32
    return %arg0, %c0_i32 : i32, i32
  }
  func.func @transform_1(%arg0: i32, %arg1: i32) -> (i32, i32) {
    %c0_i32 = arith.constant 0 : i32
    %c0_i32_0 = arith.constant 0 : i32
    return %c0_i32, %arg1 : i32, i32
  }
  func.func @transform_2(%arg0: i32, %arg1: i32) -> (i32, i32) {
    %c0_i32 = arith.constant 0 : i32
    %c0_i32_0 = arith.constant 0 : i32
    return %arg0, %c0_i32 : i32, i32
  }
  func.func @transform_3(%arg0: i32, %arg1: i32) -> (i32, i32) {
    %c0_i32 = arith.constant 0 : i32
    %c0_i32_0 = arith.constant 0 : i32
    return %arg0, %c0_i32 : i32, i32
  }
}

</mosaic_0001>

<bundles_post_ra>
// kernel: tpu_custom_call.1
= control target key start
LH: loop header
LB: loop body
LE: loop exit
PB: predicated region body
PF: predicated region fallthrough
CT: control target
= control target key end

     0   :  { %8 = vsyncpa [#allocation6], 0  ;;  %s387_s0 = inlined_call_operand.hbm [shape: bf16[16,32], index: 0, kind: input, shape index: {}]   ;;  %s388_s1 = inlined_call_operand.vmem [shape: bf16[32,128], index: 1, kind: input, shape index: {}]   ;;  %s389_s2 = inlined_call_operand.vmem [shape: s32[16,1], index: 2, kind: input, shape index: {}]   ;;  %s390_s3 = inlined_call_operand.hbm [shape: f32[16,128], index: 3, kind: output, shape index: {}]  }
   0x1   :  { %9 = vsyncpa [#allocation7], 0  ;;  %s323_s12 = smov [#allocation5]  }
   0x2   :  { %s15_s13 = sshll.u32 %s323_s12, 4  ;;  %s16_s13 = int_to_ptr.vmem [resolvable:$true] %s15_s13 }
   0x3   :  { %s287_s14 = scalar_lea.vmem %s16_s13, 128  ;;  %p292_p1 = scmp.lt.s32.totalorder %s16_s13, %s16_s13 }
   0x4   :  { %p288_p0 = scmp.ne.s32.totalorder %s16_s13, %s287_s14  ;;  %p293_p2 = scmp.lt.s32.totalorder %s287_s14, %s287_s14 }
   0x6   :  { %p294_p3 = por %p293_p2, %p292_p1 }
   0x8   :  { %p295_p4 = pnand %p294_p3, %p288_p0 }
   0xa   :  { %298 = shalt.err (!%p295_p4)
}
   0xb   :  { %s324_s15 = smov 64   ;;  %s325_s16 = smov 4  }
   0xc   :  { %21 = dma.hbm_to_vmem [thread:$0]  %s387_s0, 128, %s16_s13, [#allocation6], %s324_s15, %s324_s15, %s325_s16  }
   0xd   :  { %319 = dma.done.wait [#allocation6], 128  }
   0xe   :  { %320 = vsyncadd [#allocation6], 4294967168  ;;  %v326_v0 = vmov 0.0   ;;  %vm327_vm0 = vmmov 0   ;;  %v328_v1 = vmov 0   ;;  %v264_v2 = vld [vmem:[%s388_s1 + $0x8] sm:$0xff]   ;;  %v115_v8 = vlaneseq }
   0xf   :  { %244 = vmatprep.subr.bf16.mxu0 %v326_v0  ;;  %248 = vmatprep.mubr.msk.bf16.mxu0 %vm327_vm0, %v326_v0  ;;  %v265_v3 = vld [vmem:[%s388_s1] sm:$0xff]   ;;  %v266_v5 = vld [vmem:[#allocation5] sm:$0xff]   ;;  %v110_v6 = vld [vmem:[%s389_s2 + $0x8] sm:$0xff]  ;;  %vm64_vm1 = vcmask 261120   ;;  %vm34_vm2 = vcmask 7168   ;;  %v329_v7 = vmov -inf  }
  0x10   :  { %262 = vset.pattern.permute.xlu0 %v328_v1  ;;  %263 = vset.pattern.permute.xlu1 %v328_v1  ;;  %v109_v4 = vld [vmem:[%s389_s2] sm:$0xff]  ;;  %35 = vst.msk [vmem:[#allocation2] sm:$0xff] %vm34_vm2, %v329_v7  ;;  %36 = vst.msk [vmem:[#allocation2 + $0x8] sm:$0xff] %vm34_vm2, %v329_v7  ;;  %v116_v9 = vand.u32 127, %v115_v8  ;;  %s330_s1 = smov [#allocation8]  }
  0x11   :  { %245 = vmatpush3.bf16.msra.mxu0 %v264_v2  ;;  %118 = vperm.xlu0 %262, %v109_v4   ;;  %37 = vst.msk [vmem:[#allocation3] sm:$0xff] %vm34_vm2, %v326_v0  ;;  %38 = vst.msk [vmem:[#allocation3 + $0x8] sm:$0xff] %vm34_vm2, %v326_v0  ;;  %s225_s2 = sshll.u32 %s330_s1, 4  ;;  %s226_s2 = int_to_ptr.vmem [resolvable:$true] %s225_s2 }
  0x12   :  { %246 = vmatprep.subr.bf16.mxu0 %v326_v0  ;;  %39 = vst.msk [vmem:[#allocation4] sm:$0xff] %vm34_vm2, %v326_v0  ;;  %40 = vst.msk [vmem:[#allocation4 + $0x8] sm:$0xff] %vm34_vm2, %v326_v0  ;;  %vm131_vm4 = vcmp.lt.s32.totalorder %v116_v9, 16  ;;  %s299_s26 = scalar_lea.vmem %s226_s2, 256  ;;  %p304_p6 = scmp.lt.s32.totalorder %s226_s2, %s226_s2 }
  0x13   :  { %p300_p5 = scmp.ne.s32.totalorder %s226_s2, %s299_s26  ;;  %p305_p7 = scmp.lt.s32.totalorder %s299_s26, %s299_s26 }
  0x15   :  { %247 = vmatpush3.bf16.msra.mxu0 %v265_v3  ;;  %121 = vperm.xlu0 %262, %v110_v6   ;;  %p306_p8 = por %p305_p7, %p304_p6 }
  0x17   :  { %v147_v22 = vld [vmem:[#allocation2] sm:$0xff]  ;;  %v148_v25 = vld [vmem:[#allocation2 + $0x8] sm:$0xff]  ;;  %p307_p9 = pnand %p306_p8, %p300_p5 }
  0x18   :  { %249 = vmatmul.mubr.msk.bf16.vlgmr.msra.gmra.mxu0 %vm64_vm1, %v266_v5  ;;  %v161_v43 = vld [vmem:[#allocation3] sm:$0xff]  ;;  %v162_v47 = vld [vmem:[#allocation3 + $0x8] sm:$0xff] }
  0x19   :  { %v134_v49 = vld [vmem:[#allocation4] sm:$0xff]  ;;  %v135_v55 = vld [vmem:[#allocation4 + $0x8] sm:$0xff] }
  0x8c   :  { %v119_v10 = vpop.permute.xlu0 %118 }
  0x8d   :  { %vm123_vm3 = vcmp.eq.s32.totalorder %v116_v9, %v119_v10 }
  0x8e   :  { %v125_v12 = vsel %vm123_vm3, 4.5, %v326_v0 }
  0x90   :  { %v122_v11 = vpop.permute.xlu0 %121 }
  0x91   :  { %vm124_vm5 = vcmp.eq.s32.totalorder %v116_v9, %v122_v11 }
  0x92   :  { %v126_v18 = vsel %vm124_vm5, 4.5, %v326_v0 }
  0xd8   :  { %v102_v13 = vpop.f32.mrf.mxu0 }
  0xd9   :  { %v127_v14 = vsub.f32 %v102_v13, %v125_v12 }
  0xda   :  { %v250_v15 = vpop.f32.mrf.mxu0 }
  0xdb   :  { %v132_v16 = vsel %vm131_vm4, %v127_v14, -inf }
  0xdc   :  { %149 = vmax.xlane.f32.xlu1 %v132_v16  ;;  %v105_v17 = vpop.f32.mrf.mxu0  ;;  %v136_v38 = vsel %vm123_vm3, %v132_v16, 0.0 }
  0xdd   :  { %v128_v19 = vsub.f32 %v105_v17, %v126_v18 }
  0xde   :  { %v251_v20 = vpop.f32.mrf.mxu0 }
  0xdf   :  { %v133_v21 = vsel %vm131_vm4, %v128_v19, -inf }
  0xe0   :  { %151 = vmax.xlane.f32.xlu1 %v133_v21  ;;  %v137_v39 = vsel %vm124_vm5, %v133_v21, 0.0 }
 0x165   :  { %v150_v23 = vpop.xlane.xlu1 %149 }
 0x166   :  { %v153_v24 = vmax.f32 %v147_v22, %v150_v23 }
 0x168   :  { %v155_v26 = vsub.f32 %v147_v22, %v153_v24  ;;  %189 = vst.msk [vmem:[#allocation2] sm:$0xff] %vm34_vm2, %v153_v24  ;;  %167 = vperm.xlu0 %262, %v153_v24  }
 0x169   :  { %v152_v27 = vpop.xlane.xlu1 %151 }
 0x16a   :  { %v154_v28 = vmax.f32 %v148_v25, %v152_v27  ;;  %v157_v40 = vmul.f32 1.442695, %v155_v26 }
 0x16c   :  { %v156_v29 = vsub.f32 %v148_v25, %v154_v28  ;;  %190 = vst.msk [vmem:[#allocation2 + $0x8] sm:$0xff] %vm34_vm2, %v154_v28  ;;  %172 = vperm.xlu1 %263, %v154_v28  }
 0x16e   :  { %v159_v41 = vmul.f32 1.442695, %v156_v29 }
 0x16f   :  { %v194_v62 = vld [vmem:[#allocation2] sm:$0xff] }
 0x173   :  { %v195_v4 = vld [vmem:[#allocation2 + $0x8] sm:$0xff] }
 0x1e3   :  { %v168_v30 = vpop.permute.xlu0 %167 }
 0x1e4   :  { %v175_v31 = vsub.f32 %v132_v16, %v168_v30 }
 0x1e6   :  { %v177_v32 = vmul.f32 1.442695, %v175_v31 }
 0x1e7   :  { %v173_v33 = vpop.permute.xlu1 %172 }
 0x1e8   :  { %267 = vpow2.f32 %v177_v32  ;;  %v176_v34 = vsub.f32 %v133_v21, %v173_v33 }
 0x1ea   :  { %v179_v35 = vmul.f32 1.442695, %v176_v34 }
 0x1ec   :  { %269 = vpow2.f32 %v179_v35 }
 0x1ed   :  { %271 = vpow2.f32 %v157_v40 }
 0x1ee   :  { %273 = vpow2.f32 %v159_v41 }
 0x1f5   :  { %v268_v36 = vpop.eup %267 }
 0x1f6   :  { %181 = vadd.xlane.f32.xlu0 %v268_v36 }
 0x1f9   :  { %v270_v37 = vpop.eup %269 }
 0x1fa   :  { %183 = vadd.xlane.f32.xlu1 %v270_v37  ;;  %138 = vadd.xlane.f32.xlu0 %v136_v38  ;;  %v272_v42 = vpop.eup %271 }
 0x1fb   :  { %v163_v44 = vmul.f32 %v272_v42, %v161_v43  ;;  %v274_v45 = vpop.eup %273 }
 0x1fc   :  { %v164_v50 = vmul.f32 %v274_v45, %v162_v47 }
 0x1fe   :  { %140 = vadd.xlane.f32.xlu0 %v137_v39 }
 0x27f   :  { %v182_v46 = vpop.xlane.xlu0 %181 }
 0x280   :  { %v185_v48 = vadd.f32 %v182_v46, %v163_v44 }
 0x282   :  { %187 = vst.msk [vmem:[#allocation3] sm:$0xff] %vm34_vm2, %v185_v48 }
 0x283   :  { %v184_v51 = vpop.xlane.xlu1 %183  ;;  %v139_v52 = vpop.xlane.xlu0 %138 }
 0x284   :  { %v186_v53 = vadd.f32 %v184_v51, %v164_v50  ;;  %v142_v54 = vadd.f32 %v139_v52, %v134_v49 }
 0x286   :  { %188 = vst.msk [vmem:[#allocation3 + $0x8] sm:$0xff] %vm34_vm2, %v186_v53  ;;  %145 = vst.msk [vmem:[#allocation4] sm:$0xff] %vm34_vm2, %v142_v54 }
 0x287   :  { %v141_v56 = vpop.xlane.xlu0 %140 }
 0x288   :  { %v143_v57 = vadd.f32 %v141_v56, %v135_v55 }
 0x289   :  { %v196_v58 = vld [vmem:[#allocation3] sm:$0xff] }
 0x28a   :  { %146 = vst.msk [vmem:[#allocation4 + $0x8] sm:$0xff] %vm34_vm2, %v143_v57  ;;  %275 = vlog2.f32 %v196_v58 }
 0x28d   :  { %v197_v59 = vld [vmem:[#allocation3 + $0x8] sm:$0xff]  ;;  %v204_v1 = vld [vmem:[#allocation4] sm:$0xff] }
 0x28e   :  { %277 = vlog2.f32 %v197_v59 }
 0x291   :  { %v205_v6 = vld [vmem:[#allocation4 + $0x8] sm:$0xff] }
 0x297   :  { %v276_v60 = vpop.eup %275 }
 0x298   :  { %v199_v61 = vmul.f32 0.6931472, %v276_v60 }
 0x29a   :  { %v202_v63 = vadd.f32 %v199_v61, %v194_v62 }
 0x29b   :  { %v278_v0 = vpop.eup %277 }
 0x29c   :  { %v206_v2 = vsub.f32 %v202_v63, %v204_v1  ;;  %v201_v3 = vmul.f32 0.6931472, %v278_v0 }
 0x29e   :  { %210 = vperm.xlu0 %262, %v206_v2   ;;  %v203_v5 = vadd.f32 %v201_v3, %v195_v4 }
 0x2a0   :  { %v207_v7 = vsub.f32 %v203_v5, %v205_v6 }
 0x2a2   :  { %215 = vperm.xlu1 %263, %v207_v7  }
 0x319   :  { %v211_v8 = vpop.permute.xlu0 %210 }
 0x31a   :  { %218 = vst [vmem:[#allocation8] sm:$0xff] %v211_v8 }
 0x31d   :  { %v216_v9 = vpop.permute.xlu1 %215 }
 0x31e   :  { %219 = vst [vmem:[#allocation8 + $0x8] sm:$0xff] %v216_v9 }
 0x31f   :  { %310 = shalt.err (!%p307_p9)
}
 0x320   :  { %s331_s27 = smov 128   ;;  %s332_s28 = smov 8  }
 0x321   :  { %231 = dma.vmem_to_hbm [thread:$0]  %s226_s2, 256, %s390_s3, [#allocation7], %s331_s27, %s331_s27, %s332_s28  }
 0x322   :  { %321 = dma.done.wait [#allocation7], 256  }
 0x323   :  { %322 = vsyncadd [#allocation7], 4294967040 }
 0x324   :  { %235 = vsyncpa [#allocation6], 1 }
 0x325   :  { %236 = vsyncpa [#allocation7], 1 }

</bundles_post_ra>
